<compile_context>
chip_gen: v7x
topology: tpu7x:2x2x1
jax: 0.10.0
libtpu: 0.0.40
codegen_flags: <defaults>
</compile_context>

<pallas_src>
import functools

import jax
import jax.numpy as jnp
from jax.experimental import pallas as pl
from jax.experimental.pallas import tpu as pltpu


def _lane_fold(x, acc_w):
    """Tree-reduce the lane (last) axis of x down to width acc_w.

    Compile-time unrolled; all slice offsets are multiples of acc_w (>=128),
    so slices select whole vregs and the fold is pure VPU adds.
    """
    while (x.shape[-1] > acc_w and x.shape[-1] % 2 == 0
           and (x.shape[-1] // 2) % acc_w == 0):
        h = x.shape[-1] // 2
        x = x[:, :h] + x[:, h:]
    if x.shape[-1] > acc_w:                       # small linear remainder
        n = x.shape[-1] // acc_w
        out = x[:, :acc_w]
        for f in range(1, n):
            out = out + x[:, f * acc_w:(f + 1) * acc_w]
        x = out
    return x


def _dice_partial_kernel(score_ref, label_ref, st_ref, s_ref, t_ref, *,
                         hw, tile, acc_w, softmax, ragged):
    k = pl.program_id(1)

    @pl.when(k == 0)
    def _():
        st_ref[...] = jnp.zeros_like(st_ref)
        s_ref[...] = jnp.zeros_like(s_ref)
        t_ref[...] = jnp.zeros_like(t_ref)

    s = score_ref[...].astype(jnp.float32)            # (C, tile)
    lab = label_ref[...].astype(jnp.int32)            # (1, tile)

    if softmax:                                       # softmax over the class axis
        m = jnp.max(s, axis=0, keepdims=True)
        e = jnp.exp(s - m)
        inv = pl.reciprocal(jnp.sum(e, axis=0, keepdims=True), approx=True)
        s = e * inv

    # One-hot kept as a bool mask: intersection uses a select, not a multiply.
    cls = jax.lax.broadcasted_iota(jnp.int32, s.shape, 0)
    onehot = lab == cls                               # (C, tile) bool

    def accumulate(s_val, oh_val):
        st_ref[...] += _lane_fold(jnp.where(oh_val, s_val, 0.0), acc_w)
        s_ref[...] += _lane_fold(s_val, acc_w)
        t_ref[...] += _lane_fold(jnp.where(oh_val, 1.0, 0.0), acc_w)

    if not ragged:
        accumulate(s, onehot)
    else:
        last = pl.num_programs(1) - 1

        @pl.when(k < last)                            # hot path: no mask at all
        def _():
            accumulate(s, onehot)

        @pl.when(k == last)                           # only the last tile is masked
        def _():
            col = jax.lax.broadcasted_iota(jnp.int32, s.shape, 1) + k * tile
            valid = col < hw
            # jnp.where (not multiply) so NaN/garbage in out-of-bounds DMA
            # padding cannot poison the sums.
            accumulate(jnp.where(valid, s, 0.0), onehot & valid)


def _pick_acc_width(tile):
    for w in (512, 256, 128):
        if tile % w == 0:
            return w
    return tile


def _pick_tile(hw, c, in_bytes, lab_bytes, softmax):
    """Block lane width targeting ~1 MiB of score bytes per grid step.

    The budget counts the double-buffered input stream plus a conservative
    estimate of the f32 in-kernel temporaries (which scale with the block) and
    stays well under the 32 MiB scoped-VMEM we request (safe for v7x 64 MiB).
    """
    budget = 16 * 1024 * 1024
    n_interm = 6 if softmax else 5                    # live f32 (C, tile) temps
    per_lane = 2 * (c * in_bytes + lab_bytes) + n_interm * c * 4
    tile_max = max(512, budget // per_lane)
    if hw <= min(tile_max, 4096):
        return hw                                     # one block covers the row
    t = 512                                           # power-of-two => pure halving fold
    while t * 2 <= min(hw, tile_max):
        t *= 2
    return t


def dice_loss_evi(inputs, target, weight=None, softmax=False, tile=None):
    """Pallas implementation of DiceLoss_evi.forward.

    inputs: (B, C, H, W) float predictions (NCHW, like PyTorch)
    target: (B, 1, H, W) or (B, H, W) label map (integer-valued, any dtype)
    """
    B, C, H, W = inputs.shape
    hw = H * W

    # Free reshapes only: no transpose, no pad, native dtypes on the wire.
    score = inputs.reshape(B, C, hw)
    labels = target.reshape(B, 1, hw)

    if tile is None:
        tile = _pick_tile(hw, C, jnp.dtype(inputs.dtype).itemsize,
                          jnp.dtype(target.dtype).itemsize, softmax)
    else:
        tile = min(tile, hw)
        assert tile == hw or tile % 128 == 0, "explicit tile must be 128-aligned"
    n_tiles = pl.cdiv(hw, tile)
    ragged = (hw % tile) != 0
    acc_w = _pick_acc_width(tile)

    kernel = functools.partial(_dice_partial_kernel, hw=hw, tile=tile,
                               acc_w=acc_w, softmax=softmax, ragged=ragged)

    acc_shape = jax.ShapeDtypeStruct((B, C, acc_w), jnp.float32)
    acc_spec = pl.BlockSpec((None, C, acc_w), lambda b, k: (b, 0, 0))

    st_part, s_part, t_part = pl.pallas_call(
        kernel,
        out_shape=(acc_shape, acc_shape, acc_shape),
        grid_spec=pltpu.PrefetchScalarGridSpec(
            num_scalar_prefetch=0,
            grid=(B, n_tiles),
            in_specs=[
                pl.BlockSpec((None, C, tile), lambda b, k: (b, 0, k)),  # score
                pl.BlockSpec((None, 1, tile), lambda b, k: (b, 0, k)),  # labels
            ],
            out_specs=(acc_spec, acc_spec, acc_spec),
        ),
        compiler_params=pltpu.CompilerParams(
            dimension_semantics=("parallel", "arbitrary"),
            vmem_limit_bytes=32 * 1024 * 1024),
    )(score, labels)

    # Tiny finalization in plain JAX: cross-lane/batch reduce + weighted dice.
    inter = jnp.sum(st_part, axis=(0, 2))             # (C,)
    ssum = jnp.sum(s_part, axis=(0, 2))               # (C,)
    tsum = jnp.sum(t_part, axis=(0, 2))               # (C,)
    if weight is None:
        weight = [1.0] * C
    w = jnp.asarray(weight, jnp.float32)
    smooth = 1e-10
    dice = 1.0 - inter / (ssum + tsum + smooth)       # per-class dice loss
    return jnp.sum(dice * w) / C


def dice_loss_evi_ref(inputs, target, weight=None, softmax=False):
    """Pure-JAX reference mirroring the PyTorch module exactly."""
    B, C, H, W = inputs.shape
    inputs = inputs.astype(jnp.float32)
    if softmax:
        inputs = jax.nn.softmax(inputs, axis=1)
    onehot = (target.reshape(B, 1, H, W).astype(jnp.int32)
              == jnp.arange(C).reshape(1, C, 1, 1)).astype(jnp.float32)
    if weight is None:
        weight = [1.0] * C
    smooth = 1e-10
    loss = 0.0
    for i in range(C):
        inter = jnp.sum(inputs[:, i] * onehot[:, i])
        union = jnp.sum(inputs[:, i]) + jnp.sum(onehot[:, i]) + smooth
        loss += (1.0 - inter / union) * weight[i]
    return loss / C


if __name__ == "__main__":
    key = jax.random.PRNGKey(0)
    k1, k2, k3, k4, k5 = jax.random.split(key, 5)

    B, C, H, W = 2, 4, 16, 16
    inputs = jax.random.uniform(k1, (B, C, H, W), jnp.float32)
    # Label map like the PyTorch usage: (B, 1, H, W) with integer class ids.
    target = jax.random.randint(k2, (B, 1, H, W), 0, C).astype(jnp.float32)

    for softmax in (False, True):
        out = jax.block_until_ready(dice_loss_evi(inputs, target, softmax=softmax))
        ref = dice_loss_evi_ref(inputs, target, softmax=softmax)
        tol = 2e-3 if softmax else 1e-5   # softmax path uses the approx EUP reciprocal
        assert jnp.allclose(out, ref, atol=tol, rtol=tol), (softmax, out, ref)

    # Ragged last tile (hw=400 with a forced 128-wide tile) + class weights + softmax.
    Hr = Wr = 20
    inputs_r = jax.random.uniform(k3, (B, C, Hr, Wr), jnp.float32)
    target_r = jax.random.randint(k2, (B, 1, Hr, Wr), 0, C).astype(jnp.float32)
    wts = [0.5, 1.0, 1.5, 2.0]
    out = jax.block_until_ready(
        dice_loss_evi(inputs_r, target_r, weight=wts, softmax=True, tile=128))
    ref = dice_loss_evi_ref(inputs_r, target_r, weight=wts, softmax=True)
    assert jnp.allclose(out, ref, atol=2e-3, rtol=2e-3), (out, ref)

    # bf16 predictions stay bf16 on the wire; kernel accumulates in f32.
    out = jax.block_until_ready(dice_loss_evi(inputs.astype(jnp.bfloat16), target))
    ref = dice_loss_evi_ref(inputs.astype(jnp.bfloat16), target)
    assert jnp.allclose(out, ref, atol=1e-5, rtol=1e-5), (out, ref)

    # Lane-fold path (tile=1024 -> acc_w=512, one halving) + int32 labels + softmax.
    Hd = Wd = 32
    inputs_d = jax.random.uniform(k4, (B, C, Hd, Wd), jnp.float32)
    target_d = jax.random.randint(k2, (B, 1, Hd, Wd), 0, C)          # int32 labels
    out = jax.block_until_ready(dice_loss_evi(inputs_d, target_d, softmax=True))
    ref = dice_loss_evi_ref(inputs_d, target_d, softmax=True)
    assert jnp.allclose(out, ref, atol=2e-3, rtol=2e-3), (out, ref)

    # Multi-tile non-ragged accumulation with folding (hw=4096, explicit tile=1024).
    He = We = 64
    inputs_e = jax.random.uniform(k5, (B, C, He, We), jnp.float32)
    target_e = jax.random.randint(k2, (B, 1, He, We), 0, C).astype(jnp.float32)
    out = jax.block_until_ready(dice_loss_evi(inputs_e, target_e, tile=1024))
    ref = dice_loss_evi_ref(inputs_e, target_e)
    assert jnp.allclose(out, ref, atol=1e-5, rtol=1e-5), (out, ref)

    print("KERNEL_OK")
</pallas_src>

<mosaic_0001>
module attributes {stable_mosaic.version = 11 : i64} {
  func.func @_dice_partial_kernel(%arg0: i32, %arg1: i32, %arg2: memref<1x4x256xf32, #tpu.memory_space<vmem>>, %arg3: memref<1x1x256xf32, #tpu.memory_space<vmem>>, %arg4: memref<1x4x256xf32, #tpu.memory_space<vmem>>, %arg5: memref<1x4x256xf32, #tpu.memory_space<vmem>>, %arg6: memref<1x4x256xf32, #tpu.memory_space<vmem>>) attributes {dimension_semantics = [#tpu.dimension_semantics<parallel>, #tpu.dimension_semantics<arbitrary>], iteration_bounds = array<i64: 2, 1>, scalar_prefetch = 0 : i64, scratch_operands = 0 : i64, tpu.core_type = #tpu.core_type<tc>, window_params = [{transform_indices = @transform_0, window_bounds = array<i64: 1, 4, 256>}, {transform_indices = @transform_1, window_bounds = array<i64: 1, 1, 256>}, {transform_indices = @transform_2, window_bounds = array<i64: 1, 4, 256>}, {transform_indices = @transform_3, window_bounds = array<i64: 1, 4, 256>}, {transform_indices = @transform_4, window_bounds = array<i64: 1, 4, 256>}]} {
    %c0_i32 = arith.constant 0 : i32
    %0 = arith.cmpi eq, %arg1, %c0_i32 : i32
    %1 = arith.extui %0 : i1 to i32
    %c0_i32_0 = arith.constant 0 : i32
    %2 = arith.cmpi ne, %1, %c0_i32_0 : i32
    scf.if %2 {
      %cst_26 = arith.constant 0.000000e+00 : f32
      %34 = vector.broadcast %cst_26 : f32 to vector<4x256xf32>
      %c0_27 = arith.constant 0 : index
      %c0_28 = arith.constant 0 : index
      %c0_29 = arith.constant 0 : index
      %35 = vector.load %arg4[%c0_27, %c0_28, %c0_29] : memref<1x4x256xf32, #tpu.memory_space<vmem>>, vector<1x4x256xf32>
      %36 = vector.shape_cast %35 : vector<1x4x256xf32> to vector<4x256xf32>
      %37 = vector.shape_cast %34 : vector<4x256xf32> to vector<1x4x256xf32>
      tpu.vector_store %arg4[%c0_27, %c0_28, %c0_29], %37 {strides = array<i32>} : memref<1x4x256xf32, #tpu.memory_space<vmem>>, vector<1x4x256xf32>,
      %cst_30 = arith.constant 0.000000e+00 : f32
      %38 = vector.broadcast %cst_30 : f32 to vector<4x256xf32>
      %c0_31 = arith.constant 0 : index
      %c0_32 = arith.constant 0 : index
      %c0_33 = arith.constant 0 : index
      %39 = vector.load %arg5[%c0_31, %c0_32, %c0_33] : memref<1x4x256xf32, #tpu.memory_space<vmem>>, vector<1x4x256xf32>
      %40 = vector.shape_cast %39 : vector<1x4x256xf32> to vector<4x256xf32>
      %41 = vector.shape_cast %38 : vector<4x256xf32> to vector<1x4x256xf32>
      tpu.vector_store %arg5[%c0_31, %c0_32, %c0_33], %41 {strides = array<i32>} : memref<1x4x256xf32, #tpu.memory_space<vmem>>, vector<1x4x256xf32>,
      %cst_34 = arith.constant 0.000000e+00 : f32
      %42 = vector.broadcast %cst_34 : f32 to vector<4x256xf32>
      %c0_35 = arith.constant 0 : index
      %c0_36 = arith.constant 0 : index
      %c0_37 = arith.constant 0 : index
      %43 = vector.load %arg6[%c0_35, %c0_36, %c0_37] : memref<1x4x256xf32, #tpu.memory_space<vmem>>, vector<1x4x256xf32>
      %44 = vector.shape_cast %43 : vector<1x4x256xf32> to vector<4x256xf32>
      %45 = vector.shape_cast %42 : vector<4x256xf32> to vector<1x4x256xf32>
      tpu.vector_store %arg6[%c0_35, %c0_36, %c0_37], %45 {strides = array<i32>} : memref<1x4x256xf32, #tpu.memory_space<vmem>>, vector<1x4x256xf32>,
    } else {
    }
    %c0 = arith.constant 0 : index
    %c0_1 = arith.constant 0 : index
    %c0_2 = arith.constant 0 : index
    %3 = vector.load %arg2[%c0, %c0_1, %c0_2] : memref<1x4x256xf32, #tpu.memory_space<vmem>>, vector<1x4x256xf32>
    %4 = vector.shape_cast %3 : vector<1x4x256xf32> to vector<4x256xf32>
    %c0_3 = arith.constant 0 : index
    %c0_4 = arith.constant 0 : index
    %c0_5 = arith.constant 0 : index
    %5 = vector.load %arg3[%c0_3, %c0_4, %c0_5] : memref<1x1x256xf32, #tpu.memory_space<vmem>>, vector<1x1x256xf32>
    %6 = vector.shape_cast %5 : vector<1x1x256xf32> to vector<1x256xf32>
    %7 = arith.fptosi %6 : vector<1x256xf32> to vector<1x256xi32>
    %8 = tpu.iota {dimensions = array<i32: 0>} : vector<4x256xi32>
    %9 = vector.broadcast %7 : vector<1x256xi32> to vector<4x256xi32>
    %10 = arith.cmpi eq, %9, %8 : vector<4x256xi32>
    %c0_6 = arith.constant 0 : index
    %c0_7 = arith.constant 0 : index
    %c0_8 = arith.constant 0 : index
    %11 = vector.load %arg4[%c0_6, %c0_7, %c0_8] : memref<1x4x256xf32, #tpu.memory_space<vmem>>, vector<1x4x256xf32>
    %12 = vector.shape_cast %11 : vector<1x4x256xf32> to vector<4x256xf32>
    %cst = arith.constant 0.000000e+00 : f32
    %13 = vector.broadcast %cst : f32 to vector<4x256xf32>
    %14 = arith.select %10, %4, %13 : vector<4x256xi1>, vector<4x256xf32>
    %15 = arith.addf %12, %14 : vector<4x256xf32>
    %c0_9 = arith.constant 0 : index
    %c0_10 = arith.constant 0 : index
    %c0_11 = arith.constant 0 : index
    %16 = vector.load %arg4[%c0_9, %c0_10, %c0_11] : memref<1x4x256xf32, #tpu.memory_space<vmem>>, vector<1x4x256xf32>
    %17 = vector.shape_cast %16 : vector<1x4x256xf32> to vector<4x256xf32>
    %18 = vector.shape_cast %15 : vector<4x256xf32> to vector<1x4x256xf32>
    tpu.vector_store %arg4[%c0_9, %c0_10, %c0_11], %18 {strides = array<i32>} : memref<1x4x256xf32, #tpu.memory_space<vmem>>, vector<1x4x256xf32>,
    %c0_12 = arith.constant 0 : index
    %c0_13 = arith.constant 0 : index
    %c0_14 = arith.constant 0 : index
    %19 = vector.load %arg5[%c0_12, %c0_13, %c0_14] : memref<1x4x256xf32, #tpu.memory_space<vmem>>, vector<1x4x256xf32>
    %20 = vector.shape_cast %19 : vector<1x4x256xf32> to vector<4x256xf32>
    %21 = arith.addf %20, %4 : vector<4x256xf32>
    %c0_15 = arith.constant 0 : index
    %c0_16 = arith.constant 0 : index
    %c0_17 = arith.constant 0 : index
    %22 = vector.load %arg5[%c0_15, %c0_16, %c0_17] : memref<1x4x256xf32, #tpu.memory_space<vmem>>, vector<1x4x256xf32>
    %23 = vector.shape_cast %22 : vector<1x4x256xf32> to vector<4x256xf32>
    %24 = vector.shape_cast %21 : vector<4x256xf32> to vector<1x4x256xf32>
    tpu.vector_store %arg5[%c0_15, %c0_16, %c0_17], %24 {strides = array<i32>} : memref<1x4x256xf32, #tpu.memory_space<vmem>>, vector<1x4x256xf32>,
    %c0_18 = arith.constant 0 : index
    %c0_19 = arith.constant 0 : index
    %c0_20 = arith.constant 0 : index
    %25 = vector.load %arg6[%c0_18, %c0_19, %c0_20] : memref<1x4x256xf32, #tpu.memory_space<vmem>>, vector<1x4x256xf32>
    %26 = vector.shape_cast %25 : vector<1x4x256xf32> to vector<4x256xf32>
    %cst_21 = arith.constant 1.000000e+00 : f32
    %cst_22 = arith.constant 0.000000e+00 : f32
    %27 = vector.broadcast %cst_21 : f32 to vector<4x256xf32>
    %28 = vector.broadcast %cst_22 : f32 to vector<4x256xf32>
    %29 = arith.select %10, %27, %28 : vector<4x256xi1>, vector<4x256xf32>
    %30 = arith.addf %26, %29 : vector<4x256xf32>
    %c0_23 = arith.constant 0 : index
    %c0_24 = arith.constant 0 : index
    %c0_25 = arith.constant 0 : index
    %31 = vector.load %arg6[%c0_23, %c0_24, %c0_25] : memref<1x4x256xf32, #tpu.memory_space<vmem>>, vector<1x4x256xf32>
    %32 = vector.shape_cast %31 : vector<1x4x256xf32> to vector<4x256xf32>
    %33 = vector.shape_cast %30 : vector<4x256xf32> to vector<1x4x256xf32>
    tpu.vector_store %arg6[%c0_23, %c0_24, %c0_25], %33 {strides = array<i32>} : memref<1x4x256xf32, #tpu.memory_space<vmem>>, vector<1x4x256xf32>,
    return
  }
  func.func @transform_0(%arg0: i32, %arg1: i32) -> (i32, i32, i32) {
    %c0_i32 = arith.constant 0 : i32
    %c0_i32_0 = arith.constant 0 : i32
    return %arg0, %c0_i32, %arg1 : i32, i32, i32
  }
  func.func @transform_1(%arg0: i32, %arg1: i32) -> (i32, i32, i32) {
    %c0_i32 = arith.constant 0 : i32
    %c0_i32_0 = arith.constant 0 : i32
    return %arg0, %c0_i32, %arg1 : i32, i32, i32
  }
  func.func @transform_2(%arg0: i32, %arg1: i32) -> (i32, i32, i32) {
    %c0_i32 = arith.constant 0 : i32
    %c0_i32_0 = arith.constant 0 : i32
    %c0_i32_1 = arith.constant 0 : i32
    return %arg0, %c0_i32, %c0_i32_0 : i32, i32, i32
  }
  func.func @transform_3(%arg0: i32, %arg1: i32) -> (i32, i32, i32) {
    %c0_i32 = arith.constant 0 : i32
    %c0_i32_0 = arith.constant 0 : i32
    %c0_i32_1 = arith.constant 0 : i32
    return %arg0, %c0_i32, %c0_i32_0 : i32, i32, i32
  }
  func.func @transform_4(%arg0: i32, %arg1: i32) -> (i32, i32, i32) {
    %c0_i32 = arith.constant 0 : i32
    %c0_i32_0 = arith.constant 0 : i32
    %c0_i32_1 = arith.constant 0 : i32
    return %arg0, %c0_i32, %c0_i32_0 : i32, i32, i32
  }
}

</mosaic_0001>

<bundles_post_ra>
// kernel: tpu_custom_call.1
= control target key start
LH: loop header
LB: loop body
LE: loop exit
PB: predicated region body
PF: predicated region fallthrough
CT: control target
= control target key end

     0   :  { %10 = vsyncpa [#allocation3], 0  ;;  %s1206_s0 = inlined_call_operand.hbm [shape: f32[2,4,256], index: 0, kind: input, shape index: {}]   ;;  %s1207_s1 = inlined_call_operand.hbm [shape: f32[2,1,256], index: 1, kind: input, shape index: {}]   ;;  %s1208_s2 = inlined_call_operand.hbm [shape: f32[2,4,256], index: 2, kind: output, shape index: {0}]   ;;  %s1209_s3 = inlined_call_operand.hbm [shape: f32[2,4,256], index: 3, kind: output, shape index: {1}]   ;;  %s1210_s4 = inlined_call_operand.hbm [shape: f32[2,4,256], index: 4, kind: output, shape index: {2}]  }
   0x1   :  { %12 = vsyncpa [#allocation3 + $0x1], 0 }
   0x2   :  { %13 = vsyncpa [#allocation6], 0 }
   0x3   :  { %15 = vsyncpa [#allocation6 + $0x1], 0 }
   0x4   :  { %16 = vsyncpa [#allocation4], 0 }
   0x5   :  { %18 = vsyncpa [#allocation4 + $0x1], 0 }
   0x6   :  { %19 = vsyncpa [#allocation9], 0 }
   0x7   :  { %21 = vsyncpa [#allocation9 + $0x1], 0  ;;  %s911_s15 = smov 0   ;;  %s913_s16 = smov 0  }
   0x8   :  { %s915_s17 = smov 0   ;;  %s917_s18 = smov 0  }
   0x9   :  { %s919_s19 = smov 0   ;;  %s921_s20 = smov 0  }
   0xa LB: > { %s942_s21 = sadd.s32 4294967295, %s878_s20   ;;  %s1212_s22 = sadd.s32 4294967294, %s878_s20   ;;  %s878_s20 = sphi %s921_s20, %s27_s20   ;;  %s874_s19 = sphi %s919_s19, %s1232_s19   ;;  %s870_s18 = sphi %s917_s18, %s1231_s18   ;;  %s866_s17 = sphi %s915_s17, %s1230_s17   ;;  %s862_s16 = sphi %s913_s16, %s1229_s16   ;;  %s858_s15 = sphi %s911_s15, %s1228_s15  }
   0xb   : > { %s39_s23 = sadd.s32 1, %s874_s19  ;;  %s48_s24 = sadd.s32 1, %s866_s17 }
   0xc   : > { %p41_p0 = scmp.ge.s32.totalorder %s39_s23, 2  ;;  %p55_p1 = scmp.ne.s32.totalorder %s866_s17, %s862_s16 }
   0xd   : > { %p56_p2 = scmp.eq.s32.totalorder %s878_s20, 0  ;;  %p61_p3 = scmp.ne.s32.totalorder %s862_s16, %s858_s15 }
   0xe   : > { %s1234_s23 = smov (%p41_p0, %s39_s23), 0  ;;  %p62_p5 = scmp.eq.s32.totalorder %s942_s21, 0 }
   0xf   : > { %p954_p4 = por %p56_p2, %p55_p1  ;;  %s43_s26 = ssub.s32 %s874_s19, %s1234_s23 }
  0x10   : > { %p113_p6 = scmp.eq.s32.totalorder %s942_s21, 1  ;;  %p46_p7 = scmp.eq.s32.totalorder %s43_s26, 0 }
  0x11   : > { %p962_p8 = por %p62_p5, %p61_p3  ;;  %p119_p10 = scmp.eq.s32.totalorder %s1212_s22, 1 }
  0x12   : > { %p966_p9 = por %p113_p6, %p55_p1  ;;  %p620_p13 = scmp.lt.s32.totalorder %s878_s20, 2 }
  0x13   : > { %s1215_s27 = scalar_select %p962_p8, 1, 0 }
  0x14   : > { %s1216_s28 = scalar_select %p966_p9, 1, 0 }
  0x15   : > { %s973_s29 = scalar_select %p46_p7, %s866_s17, %s48_s24  }
  0x16   : > { %p975_p11 = por %p119_p10, %p61_p3  ;;  %s982_s5 = sand.u32 1, %s866_s17  }
  0x17   : > { %s563_s6 = sshll.u32 %s982_s5, 3  ;;  %s586_s7 = sshll.u32 %s874_s19, 7 }
  0x18   : > { %s1217_s30 = scalar_select %p975_p11, 1, 0 }
  0x19   : > { %s989_s10 = scalar_lea.hbm %s1206_s0, %s586_s7  ;;  %s195_s11 = scalar_lea.vmem [#allocation2], %s563_s6 }
  0x1a   : > { %s205_s12 = sshll.u32 %s195_s11, 4  ;;  %p995_p0 = pnand %p620_p13, %p954_p4  ;;  %s991_s12 = int_to_ptr.vmem [resolvable:$true] %s205_s12 }
  0x1b   : > { %s192_s14 = scalar_lea.sflag [#allocation3], %s982_s5  ;;  %s672_s24 = scalar_lea.hbm %s989_s10, 128 }
  0x1c   : > { %p673_p3 = scmp.ne.s32.totalorder %s989_s10, %s672_s24  ;;  %p674_p5 = pneg %p995_p0 }
  0x1d   : > { %s677_s25 = scalar_lea.hbm %s1206_s0, 256  ;;  %p678_p4 = scmp.lt.u32.totalorder %s989_s10, %s1206_s0 }
  0x1e   : > { %p675_p6 = pnand %p674_p5, %p673_p3  ;;  %p679_p10 = scmp.lt.u32.totalorder %s677_s25, %s672_s24 }
  0x1f   : > { %p681_p12 = scmp.lt.u32.totalorder %s672_s24, %s989_s10 }
  0x20   : > { %p676_p7 = pneg %p675_p6  ;;  %p680_p13 = por %p679_p10, %p678_p4 }
  0x22   : > { %p682_p1 = por %p681_p12, %p680_p13 }
  0x24   : > { %p683_p2 = pnand %p682_p1, %p676_p7 }
  0x26   : > { %686 = shalt.err (!%p683_p2)
}
  0x27   : > { %s687_s9 = scalar_lea.vmem %s991_s12, 128  ;;  %s880_s11 = smov [#allocation2]  }
  0x28   : > { %p688_p3 = scmp.ne.s32.totalorder %s991_s12, %s687_s9  ;;  %s692_s26 = sshll.u32 %s880_s11, 4  ;;  %s693_s26 = int_to_ptr.vmem [resolvable:$false] %s692_s26 }
  0x29   : > { %s694_s6 = scalar_lea.vmem %s693_s26, 256  ;;  %p695_p9 = scmp.lt.s32.totalorder %s991_s12, %s693_s26 }
  0x2a   : > { %p690_p6 = pnand %p688_p3, %p674_p5  ;;  %p696_p4 = scmp.lt.s32.totalorder %s694_s6, %s687_s9 }
  0x2c   : > { %p691_p11 = pneg %p690_p6  ;;  %p697_p10 = por %p696_p4, %p695_p9 }
  0x2e   : > { %p698_p12 = pnand %p697_p10, %p691_p11 }
  0x30   : > { %701 = shalt.err (!%p698_p12)
}
  0x31   : > { %606 = dma.hbm_to_vmem [thread:$0]  (!%p995_p0), %s989_s10, 128, %s991_s12, %s192_s14  }
  0x32   : > { %p1219_p1 = scmp.lt.s32.totalorder %s878_s20, 3  ;;  %p1220_p2 = scmp.ge.s32.totalorder %s878_s20, 1 }
  0x33   : > { %s566_s25 = sshll.u32 %s982_s5, 1  ;;  %s587_s7 = sshll.u32 %s874_s19, 5 }
  0x34   : > { %p1031_p7 = pnand %p1220_p2, %p1219_p1  ;;  %s1040_s11 = scalar_lea.hbm %s1207_s1, %s587_s7 }
  0x35   : > { %s216_s26 = scalar_lea.vmem [#allocation5], %s566_s25  ;;  %s213_s10 = scalar_lea.sflag [#allocation6], %s982_s5 }
  0x36   : > { %s1221_s24 = scalar_select %p1031_p7, 1, 0 }
  0x37   : > { %s226_s6 = sshll.u32 %s216_s26, 4  ;;  %s702_s12 = scalar_lea.hbm %s1040_s11, 32  ;;  %s227_s6 = int_to_ptr.vmem [resolvable:$true] %s226_s6 }
  0x38   : > { %p703_p9 = scmp.ne.s32.totalorder %s1040_s11, %s702_s12  ;;  %s707_s8 = scalar_lea.hbm %s1207_s1, 64 }
  0x39   : > { %p708_p3 = scmp.lt.u32.totalorder %s1040_s11, %s1207_s1  ;;  %p709_p6 = scmp.lt.u32.totalorder %s707_s8, %s702_s12 }
  0x3a   : > { %p705_p11 = pnand %p703_p9, %p674_p5  ;;  %p711_p10 = scmp.lt.u32.totalorder %s702_s12, %s1040_s11 }
  0x3b   : > { %p710_p4 = por %p709_p6, %p708_p3 }
  0x3c   : > { %p706_p13 = pneg %p705_p11 }
  0x3d   : > { %p712_p12 = por %p711_p10, %p710_p4 }
  0x3f   : > { %p713_p1 = pnand %p712_p12, %p706_p13 }
  0x41   : > { %716 = shalt.err (!%p713_p1)
}
  0x42   : > { %s717_s5 = scalar_lea.vmem %s227_s6, 32  ;;  %s881_s25 = smov [#allocation5]  }
  0x43   : > { %p718_p2 = scmp.ne.s32.totalorder %s227_s6, %s717_s5  ;;  %s722_s22 = sshll.u32 %s881_s25, 4  ;;  %s723_s22 = int_to_ptr.vmem [resolvable:$false] %s722_s22 }
  0x44   : > { %s724_s26 = scalar_lea.vmem %s723_s22, 64  ;;  %p725_p8 = scmp.lt.s32.totalorder %s227_s6, %s723_s22 }
  0x45   : > { %p720_p9 = pnand %p718_p2, %p674_p5  ;;  %p726_p7 = scmp.lt.s32.totalorder %s724_s26, %s717_s5 }
  0x47   : > { %p721_p11 = pneg %p720_p9  ;;  %p727_p3 = por %p726_p7, %p725_p8 }
  0x49   : > { %p728_p6 = pnand %p727_p3, %p721_p11 }
  0x4b   : > { %731 = shalt.err (!%p728_p6)
}
  0x4c   : > { %609 = dma.hbm_to_vmem [thread:$0]  (!%p995_p0), %s1040_s11, 32, %s227_s6, %s213_s10  }
  0x4d   : > { %p1222_p13 = scmp.ne.s32.totalorder %s1221_s24, 0 }
  0x4e   : > { %s1065_s12 = sand.u32 (!%p1222_p13), 1, %s862_s16   ;;  %p1223_p8 = scmp.ne.s32.totalorder (!%p1222_p13), %s1215_s27, 0 }
  0x4f   : > { %235 = sbr.rel (%p1222_p13) target bundleno = 164 (0xa4), region = 28  ;;  %s1068_s14 = sshll.u32 (!%p1222_p13), %s1065_s12, 3 }
  0x50   : > { %s238_s8 = scalar_lea.sflag (!%p1222_p13), [#allocation3], %s1065_s12  ;;  %s241_s7 = scalar_lea.vmem (!%p1222_p13), [#allocation2], %s1068_s14 }
  0x56   : > { %841 = dma.done.wait (%p1223_p8), %s238_s8, 128  }
  0x57   : > { %843 = vsyncadd (%p1223_p8), %s238_s8, 4294967168  ;;  %s571_s13 = sshll.u32 %s1065_s12, 1  ;;  %s247_s24 = scalar_lea.sflag [#allocation6], %s1065_s12 }
  0x58   : > { %s250_s11 = scalar_lea.vmem [#allocation5], %s571_s13 }
  0x59   : > { %845 = dma.done.wait (%p1223_p8), %s247_s24, 32  }
  0x5a   : > { %847 = vsyncadd (%p1223_p8), %s247_s24, 4294967264  ;;  %v302_v0 = vlaneseq  ;;  %s343_s6 = sand.u32 1, %s942_s21   ;;  %s1084_s10 = sshll.u32 %s870_s18, 7  ;;  %v299_v2 = vld [vmem:[%s241_s7] sm:$0xff]  ;;  %v300_v3 = vld [vmem:[%s250_s11] sm:$0x3] }
  0x5b   : > { %s282_s9 = scalar_lea.vmem [#allocation8], %s1068_s14  ;;  %v591_v4 = vtrunc.f32 %v300_v3  ;;  %s1091_s22 = scalar_lea.hbm %s1209_s3, %s1084_s10  ;;  %v316_v8 = vcombine.high %v299_v2, %v299_v2 }
  0x5c   : > { %v303_v1 = vshrl.u32 %v302_v0, 7  ;;  %s377_s5 = sshll.u32 %s282_s9, 4  ;;  %328 = vst [vmem:[%s282_s9] sm:$0xff] %v299_v2  ;;  %s1095_s18 = scalar_lea.sflag [#allocation9], %s343_s6  ;;  %s1093_s5 = int_to_ptr.vmem [resolvable:$true] %s377_s5 }
  0x5d   : > { %v592_v7 = vcvt.f32.s32 %v591_v4  ;;  %s732_s21 = scalar_lea.vmem %s1093_s5, 128  ;;  %p1224_p5 = scmp.ne.s32.totalorder %s1216_s28, 0 }
  0x5e   : > { %v306_v5 = vsub.s32 0, %v303_v1  ;;  %v310_v6 = vsub.s32 1, %v303_v1  ;;  %p733_p0 = scmp.ne.s32.totalorder %s1093_s5, %s732_s21  ;;  %s882_s26 = smov [#allocation8]  }
  0x5f   : > { %s736_s8 = sshll.u32 %s882_s26, 4  ;;  %s737_s8 = int_to_ptr.vmem [resolvable:$false] %s736_s8 }
  0x60   : > { %p734_p7 = pnand %p733_p0, %p1224_p5  ;;  %s738_s7 = scalar_lea.vmem %s737_s8, 256 }
  0x61   : > { %p739_p10 = scmp.lt.s32.totalorder %s1093_s5, %s737_s8  ;;  %p740_p12 = scmp.lt.s32.totalorder %s738_s7, %s732_s21 }
  0x62   : > { %p735_p4 = pneg %p734_p7 }
  0x63   : > { %p741_p1 = por %p740_p12, %p739_p10 }
  0x65   : > { %p742_p2 = pnand %p741_p1, %p735_p4 }
  0x67   : > { %745 = shalt.err (!%p742_p2)
}
  0x68   : > { %s746_s13 = scalar_lea.hbm %s1091_s22, 128  ;;  %s750_s6 = scalar_lea.hbm %s1209_s3, 256 }
  0x69   : > { %p747_p9 = scmp.ne.s32.totalorder %s1091_s22, %s746_s13  ;;  %p751_p6 = scmp.lt.u32.totalorder %s1091_s22, %s1209_s3 }
  0x6a   : > { %p752_p13 = scmp.lt.u32.totalorder %s750_s6, %s746_s13  ;;  %p754_p0 = scmp.lt.u32.totalorder %s746_s13, %s1091_s22 }
  0x6b   : > { %p748_p11 = pnand %p747_p9, %p1224_p5 }
  0x6c   : > { %p753_p8 = por %p752_p13, %p751_p6 }
  0x6d   : > { %p749_p3 = pneg %p748_p11 }
  0x6e   : > { %p755_p7 = por %p754_p0, %p753_p8 }
  0x70   : > { %p756_p4 = pnand %p755_p7, %p749_p3 }
  0x72   : > { %759 = shalt.err (!%p756_p4)
}
  0x73   : > { %598 = dma.vmem_to_hbm [thread:$0]  (%p1224_p5), %s1093_s5, 128, %s1091_s22, %s1095_s18   ;;  %v307_v9 = vrot.slane %v592_v7, %v306_v5  ;;  %v311_v10 = vrot.slane %v592_v7, %v310_v6  ;;  %v883_v13 = vmov 0.0  }
  0x74   : > { %s275_s27 = scalar_lea.vmem [#allocation7], %s1068_s14  ;;  %s289_s26 = scalar_lea.vmem [#allocation10], %s1068_s14 }
  0x75   : > { %vm312_vm0 = vcmp.eq.s32.totalorder %v307_v9, %v303_v1  ;;  %vm313_vm1 = vcmp.eq.s32.totalorder %v311_v10, %v303_v1  ;;  %s363_s21 = sshll.u32 %s275_s27, 4  ;;  %s391_s8 = sshll.u32 %s289_s26, 4  ;;  %s1127_s21 = int_to_ptr.vmem [resolvable:$true] %s363_s21  ;;  %s1129_s8 = int_to_ptr.vmem [resolvable:$true] %s391_s8 }
  0x76   : > { %v318_v11 = vsel %vm312_vm0, %v299_v2, 0.0  ;;  %v319_v12 = vsel %vm313_vm1, %v316_v8, 0.0  ;;  %v330_v14 = vsel %vm312_vm0, 1.0, %v883_v13  ;;  %v331_v15 = vsel %vm313_vm1, 1.0, %v883_v13  ;;  %s1125_s7 = scalar_lea.hbm %s1208_s2, %s1084_s10  ;;  %s1135_s11 = scalar_lea.hbm %s1210_s4, %s1084_s10 }
  0x77   : > { %v322_v16 = vcombine.low %v318_v11, %v319_v12  ;;  %v334_v17 = vcombine.low %v330_v14, %v331_v15  ;;  %s339_s14 = scalar_lea.sflag [#allocation4], %s1065_s12  ;;  %s760_s6 = scalar_lea.vmem %s1127_s21, 128 }
  0x78   : > { %p761_p10 = scmp.ne.s32.totalorder %s1127_s21, %s760_s6  ;;  %s884_s9 = smov [#allocation7]  }
  0x79   : > { %325 = vst [vmem:[%s275_s27] sm:$0xff] %v322_v16  ;;  %337 = vst [vmem:[%s289_s26] sm:$0xff] %v334_v17  ;;  %s764_s25 = sshll.u32 %s884_s9, 4  ;;  %s765_s25 = int_to_ptr.vmem [resolvable:$false] %s764_s25 }
  0x7a   : > { %p762_p12 = pnand %p761_p10, %p1224_p5  ;;  %s766_s5 = scalar_lea.vmem %s765_s25, 256 }
  0x7b   : > { %p767_p2 = scmp.lt.s32.totalorder %s1127_s21, %s765_s25  ;;  %p768_p9 = scmp.lt.s32.totalorder %s766_s5, %s760_s6 }
  0x7c   : > { %p763_p1 = pneg %p762_p12 }
  0x7d   : > { %p769_p11 = por %p768_p9, %p767_p2 }
  0x7f   : > { %p770_p3 = pnand %p769_p11, %p763_p1 }
  0x81   : > { %773 = shalt.err (!%p770_p3)
}
  0x82   : > { %s774_s12 = scalar_lea.hbm %s1125_s7, 128  ;;  %s778_s26 = scalar_lea.hbm %s1208_s2, 256 }
  0x83   : > { %p775_p6 = scmp.ne.s32.totalorder %s1125_s7, %s774_s12  ;;  %p779_p0 = scmp.lt.u32.totalorder %s1125_s7, %s1208_s2 }
  0x84   : > { %p780_p7 = scmp.lt.u32.totalorder %s778_s26, %s774_s12  ;;  %p782_p10 = scmp.lt.u32.totalorder %s774_s12, %s1125_s7 }
  0x85   : > { %p776_p13 = pnand %p775_p6, %p1224_p5 }
  0x86   : > { %p781_p4 = por %p780_p7, %p779_p0 }
  0x87   : > { %p777_p8 = pneg %p776_p13 }
  0x88   : > { %p783_p12 = por %p782_p10, %p781_p4 }
  0x8a   : > { %p784_p1 = pnand %p783_p12, %p777_p8 }
  0x8c   : > { %787 = shalt.err (!%p784_p1)
}
  0x8d   : > { %597 = dma.vmem_to_hbm [thread:$0]  (%p1224_p5), %s1127_s21, 128, %s1125_s7, %s339_s14  }
  0x8e   : > { %s788_s24 = scalar_lea.vmem %s1129_s8, 128  ;;  %s885_s6 = smov [#allocation10]  }
  0x8f   : > { %p789_p2 = scmp.ne.s32.totalorder %s1129_s8, %s788_s24  ;;  %s792_s9 = sshll.u32 %s885_s6, 4  ;;  %s793_s9 = int_to_ptr.vmem [resolvable:$false] %s792_s9 }
  0x90   : > { %s794_s25 = scalar_lea.vmem %s793_s9, 256  ;;  %p795_p3 = scmp.lt.s32.totalorder %s1129_s8, %s793_s9 }
  0x91   : > { %p790_p9 = pnand %p789_p2, %p1224_p5  ;;  %p796_p6 = scmp.lt.s32.totalorder %s794_s25, %s788_s24 }
  0x93   : > { %p791_p11 = pneg %p790_p9  ;;  %p797_p13 = por %p796_p6, %p795_p3 }
  0x95   : > { %p798_p8 = pnand %p797_p13, %p791_p11 }
  0x97   : > { %801 = shalt.err (!%p798_p8)
}
  0x98   : > { %s802_s21 = scalar_lea.hbm %s1135_s11, 128  ;;  %s806_s5 = scalar_lea.hbm %s1210_s4, 256 }
  0x99   : > { %p803_p0 = scmp.ne.s32.totalorder %s1135_s11, %s802_s21  ;;  %p807_p10 = scmp.lt.u32.totalorder %s1135_s11, %s1210_s4 }
  0x9a   : > { %p808_p12 = scmp.lt.u32.totalorder %s806_s5, %s802_s21  ;;  %p810_p2 = scmp.lt.u32.totalorder %s802_s21, %s1135_s11 }
  0x9b   : > { %p804_p7 = pnand %p803_p0, %p1224_p5 }
  0x9c   : > { %p809_p1 = por %p808_p12, %p807_p10 }
  0x9d   : > { %p805_p4 = pneg %p804_p7 }
  0x9e   : > { %p811_p9 = por %p810_p2, %p809_p1 }
  0xa0   : > { %p812_p11 = pnand %p811_p9, %p805_p4 }
  0xa2   : > { %815 = shalt.err (!%p812_p11)
}
  0xa3   : > { %599 = dma.vmem_to_hbm [thread:$0]  (%p1224_p5), %s1129_s8, 128, %s1135_s11, %s1095_s18  }
  0xa4 PF: > { %s403_s27 = sand.u32 1, %s858_s15   ;;  %p1225_p3 = scmp.ne.s32.totalorder %s1217_s30, 0 }
  0xa5   : > { %p1226_p6 = scmp.ge.s32.totalorder %s878_s20, 2  ;;  %s404_s26 = scalar_lea.sflag [#allocation4], %s403_s27 }
  0xa7   : > { %p611_p13 = pnand %p1226_p6, %p1225_p3 }
  0xa9   : > { %849 = dma.done.wait (!%p611_p13), %s404_s26, 128  }
  0xaa   : > { %851 = vsyncadd (!%p611_p13), %s404_s26, 4294967168  ;;  %s1227_s22 = sadd.s32 4294967294, %s878_s20  }
  0xab   : > { %s412_s13 = sand.u32 1, %s1227_s22  }
  0xac   : > { %s413_s24 = scalar_lea.sflag [#allocation9], %s412_s13 }
  0xad   : > { %853 = dma.done.wait (!%p611_p13), %s413_s24, 256  }
  0xae   : > { %855 = vsyncadd (!%p611_p13), %s413_s24, 4294967040  ;;  %s27_s20 = sadd.s32 1, %s878_s20   ;;  %s1228_s15 = smov %s862_s16 }
  0xaf   : > { %p24_p5 = scmp.ge.s32.totalorder %s27_s20, 4   ;;  %s1229_s16 = smov %s866_s17 }
  0xb0   : > { %s1230_s17 = smov %s973_s29  ;;  %s1231_s18 = smov %s874_s19 }
  0xb1   : > { %s1232_s19 = smov %s1234_s23  ;;  %26 = sbr.rel (!%p24_p5) target bundleno = 10 (0xa), region = 122 }
  0xb8   :  { %427 = vsyncpa [#allocation3], 1 }
  0xb9   :  { %429 = vsyncpa [#allocation3 + $0x1], 1 }
  0xba   :  { %430 = vsyncpa [#allocation6], 1 }
  0xbb   :  { %432 = vsyncpa [#allocation6 + $0x1], 1 }
  0xbc   :  { %433 = vsyncpa [#allocation4], 1 }
  0xbd   :  { %435 = vsyncpa [#allocation4 + $0x1], 1 }
  0xbe   :  { %436 = vsyncpa [#allocation9], 1 }
  0xbf   :  { %438 = vsyncpa [#allocation9 + $0x1], 1 }

</bundles_post_ra>
